<compile_context>
chip_gen: v7x
topology: tpu7x:2x2x1
jax: 0.10.0
libtpu: 0.0.40
codegen_flags: <defaults>
</compile_context>

<pallas_src>
import functools
import math

import jax
import jax.numpy as jnp
from jax import lax
from jax.experimental import pallas as pl
from jax.experimental.pallas import tpu as pltpu

_MASK_VALUE = -1e30  # finite "minus infinity" for masked (padded) KV positions


def _round_up(a, b):
    return ((a + b - 1) // b) * b


# --------------------------- kernel 1: QKV projection ------------------------


def qkv_proj_kernel(x_ref, w_ref, b_ref, qkv_ref):
    # (tq, Dp) bf16 @ (Dp, Dp) bf16 -> f32 accumulate, + f32 bias, store bf16.
    acc = jnp.dot(x_ref[...], w_ref[...], preferred_element_type=jnp.float32)
    qkv_ref[...] = (acc + b_ref[...]).astype(qkv_ref.dtype)


# ------------------ kernel 2a: single-KV-step attention ----------------------


def _attn_single_kernel(q_ref, k_ref, v_ref, o_ref, *, n_valid, needs_mask):
    # Whole K/V resident in VMEM -> plain softmax per q tile (no online rescale).
    s = lax.dot_general(                       # scores = q @ k^T  (f32 accumulate)
        q_ref[...], k_ref[...],
        dimension_numbers=(((1,), (1,)), ((), ())),
        preferred_element_type=jnp.float32)
    if needs_mask:
        kv_idx = lax.broadcasted_iota(jnp.int32, s.shape, 1)
        s = jnp.where(kv_idx < n_valid, s, _MASK_VALUE)
    m = jnp.max(s, axis=-1, keepdims=True)
    p = jnp.exp(s - m)
    l = jnp.sum(p, axis=-1, keepdims=True)
    o = jnp.dot(p.astype(v_ref.dtype), v_ref[...],
                preferred_element_type=jnp.float32)
    o_ref[...] = o * pl.reciprocal(l, approx=False)


# --------------------- kernel 2b: flash attention (long N) -------------------


def _flash_attn_kernel(q_ref, k_ref, v_ref, o_ref, m_sc, l_sc, acc_sc,
                       *, n_valid, tk, needs_mask):
    kv = pl.program_id(1)

    @pl.when(kv == 0)
    def _():
        m_sc[...] = jnp.full_like(m_sc, -jnp.inf)
        l_sc[...] = jnp.zeros_like(l_sc)
        acc_sc[...] = jnp.zeros_like(acc_sc)

    # scores = q @ k^T (scale already folded into the query projection weights).
    s = lax.dot_general(
        q_ref[...], k_ref[...],
        dimension_numbers=(((1,), (1,)), ((), ())),
        preferred_element_type=jnp.float32)

    if needs_mask:
        kv_idx = kv * tk + lax.broadcasted_iota(jnp.int32, s.shape, 1)
        s = jnp.where(kv_idx < n_valid, s, _MASK_VALUE)

    # Online (flash) softmax update, all stats in f32.
    m_prev = m_sc[...]
    m_new = jnp.maximum(m_prev, jnp.max(s, axis=-1, keepdims=True))
    alpha = jnp.exp(m_prev - m_new)
    p = jnp.exp(s - m_new)
    l_sc[...] = alpha * l_sc[...] + jnp.sum(p, axis=-1, keepdims=True)
    acc_sc[...] = alpha * acc_sc[...] + jnp.dot(
        p.astype(v_ref.dtype), v_ref[...], preferred_element_type=jnp.float32)
    m_sc[...] = m_new

    @pl.when(kv == pl.num_programs(1) - 1)
    def _():
        o_ref[...] = acc_sc[...] * pl.reciprocal(l_sc[...], approx=False)


# --------------------------------- wrapper ------------------------------------


def self_attention_pallas(x, wq, bq, wk, bk, wv, bv):
    """x: (N, D); wq/wk/wv: PyTorch-style (out, in) = (D, D); b*: (D,)."""
    n, d = x.shape
    f32 = jnp.float32
    bf16 = jnp.bfloat16
    scale = 1.0 / math.sqrt(float(d))

    d_pad = _round_up(d, 128)  # lane-dense feature axis

    # ---- tile / path selection -------------------------------------------------
    if n <= 256:
        # Short sequences: one (n_pad x n_pad) tile; avoid padding N up to 128+.
        tq = _round_up(n, 16)           # bf16-friendly sublane multiple
        n_pad = tq
        tk = n_pad
        single_step = True
    else:
        tq = 256                        # fills the 256-wide MXU on v6e/v7x
        n_pad = _round_up(n, tq)
        if n_pad <= 2048:
            # K+V (bf16) fit comfortably in VMEM on all generations -> one KV step,
            # plain softmax, no online rescale.
            tk = n_pad
            single_step = True
        else:
            tq, tk = 256, 512
            n_pad = _round_up(n, 512)   # lcm(tq, tk)
            single_step = False
    needs_mask = n_pad != n

    def pad_w(w):  # (D, D) -> (Dp, Dp), zero-padded
        return jnp.pad(w.astype(f32), ((0, d_pad - d), (0, d_pad - d)))

    def pad_b(b):  # (D,) -> (1, Dp), zero-padded
        return jnp.pad(b.astype(f32), (0, d_pad - d)).reshape(1, d_pad)

    # Fused QKV weight (bf16) / bias (f32); 1/sqrt(D) folded into the query proj.
    w_qkv = jnp.concatenate(
        [pad_w(wq.T * scale), pad_w(wk.T), pad_w(wv.T)], axis=1).astype(bf16)
    b_qkv = jnp.concatenate(
        [pad_b(bq * scale), pad_b(bk), pad_b(bv)], axis=1)           # (1, 3*Dp) f32

    x_pad = jnp.pad(x.astype(f32),
                    ((0, n_pad - n), (0, d_pad - d))).astype(bf16)   # (Np, Dp) bf16

    n_row_tiles = n_pad // tq

    # ---- Kernel 1: fused QKV projection, tiled over rows x {q,k,v} blocks ------
    qkv = pl.pallas_call(
        qkv_proj_kernel,
        out_shape=jax.ShapeDtypeStruct((n_pad, 3 * d_pad), bf16),
        grid_spec=pltpu.PrefetchScalarGridSpec(
            num_scalar_prefetch=0,
            grid=(n_row_tiles, 3),
            in_specs=[
                # x tile: constant over the inner j axis -> not re-DMAed.
                pl.BlockSpec((tq, d_pad), lambda i, j: (i, 0)),
                # one (Dp, Dp) weight column-block per step (bounds VMEM at big D).
                pl.BlockSpec((d_pad, d_pad), lambda i, j: (0, j)),
                pl.BlockSpec((1, d_pad), lambda i, j: (0, j)),
            ],
            out_specs=pl.BlockSpec((tq, d_pad), lambda i, j: (i, j)),
        ),
        compiler_params=pltpu.CompilerParams(
            dimension_semantics=("parallel", "arbitrary")),
        cost_estimate=pl.CostEstimate(
            flops=2 * n_pad * d_pad * 3 * d_pad,
            transcendentals=0,
            bytes_accessed=(2 * n_pad * d_pad                       # x (bf16)
                            + 2 * 3 * d_pad * d_pad * n_row_tiles   # W re-read per row tile
                            + 4 * 3 * d_pad                         # bias (f32)
                            + 2 * n_pad * 3 * d_pad)),              # qkv out (bf16)
    )(x_pad, w_qkv, b_qkv)

    # ---- Kernel 2: attention ----------------------------------------------------
    if single_step:
        kernel = functools.partial(
            _attn_single_kernel, n_valid=n, needs_mask=needs_mask)
        out_pad = pl.pallas_call(
            kernel,
            out_shape=jax.ShapeDtypeStruct((n_pad, d_pad), f32),
            grid_spec=pltpu.PrefetchScalarGridSpec(
                num_scalar_prefetch=0,
                grid=(n_row_tiles,),
                in_specs=[
                    # q / k / v are column-blocks 0 / 1 / 2 of the fused qkv array.
                    pl.BlockSpec((tq, d_pad), lambda i: (i, 0)),
                    # K / V: whole sequence, constant index -> resident across q tiles.
                    pl.BlockSpec((n_pad, d_pad), lambda i: (0, 1)),
                    pl.BlockSpec((n_pad, d_pad), lambda i: (0, 2)),
                ],
                out_specs=pl.BlockSpec((tq, d_pad), lambda i: (i, 0)),
            ),
            compiler_params=pltpu.CompilerParams(
                dimension_semantics=("parallel",)),
            cost_estimate=pl.CostEstimate(
                flops=4 * n_pad * n_pad * d_pad,
                transcendentals=n_pad * n_pad,
                bytes_accessed=(2 * n_pad * d_pad          # q (bf16)
                                + 2 * 2 * n_pad * d_pad    # K+V read once (resident)
                                + 4 * n_pad * d_pad)),     # out (f32)
        )(qkv, qkv, qkv)
    else:
        kernel = functools.partial(
            _flash_attn_kernel, n_valid=n, tk=tk, needs_mask=needs_mask)
        out_pad = pl.pallas_call(
            kernel,
            out_shape=jax.ShapeDtypeStruct((n_pad, d_pad), f32),
            grid_spec=pltpu.PrefetchScalarGridSpec(
                num_scalar_prefetch=0,
                grid=(n_row_tiles, n_pad // tk),
                in_specs=[
                    pl.BlockSpec((tq, d_pad), lambda qi, ki: (qi, 0)),
                    pl.BlockSpec((tk, d_pad), lambda qi, ki: (ki, 1)),
                    pl.BlockSpec((tk, d_pad), lambda qi, ki: (ki, 2)),
                ],
                out_specs=pl.BlockSpec((tq, d_pad), lambda qi, ki: (qi, 0)),
                scratch_shapes=[
                    pltpu.VMEM((tq, 1), f32),       # running row max  m
                    pltpu.VMEM((tq, 1), f32),       # running denom    l
                    pltpu.VMEM((tq, d_pad), f32),   # output accumulator
                ],
            ),
            compiler_params=pltpu.CompilerParams(
                dimension_semantics=("parallel", "arbitrary")),
            cost_estimate=pl.CostEstimate(
                flops=4 * n_pad * n_pad * d_pad,
                transcendentals=n_pad * n_pad,
                bytes_accessed=(2 * n_pad * d_pad                        # q (bf16)
                                + n_row_tiles * 2 * 2 * n_pad * d_pad    # K+V re-read per q tile
                                + 4 * n_pad * d_pad)),                   # out (f32)
        )(qkv, qkv, qkv)

    return out_pad[:n, :d]


# ------------------------------ reference / test ------------------------------


def _torch_linear_init(key, out_features, in_features):
    """Deterministic init mimicking nn.Linear default (uniform(-1/sqrt(in), 1/sqrt(in)))."""
    kw, kb = jax.random.split(key)
    bound = 1.0 / math.sqrt(in_features)
    w = jax.random.uniform(kw, (out_features, in_features), jnp.float32, -bound, bound)
    b = jax.random.uniform(kb, (out_features,), jnp.float32, -bound, bound)
    return w, b


def reference_self_attention(x, wq, bq, wk, bk, wv, bv):
    q = x @ wq.T + bq
    k = x @ wk.T + bk
    v = x @ wv.T + bv
    scores = (q @ k.T) / math.sqrt(x.shape[-1])
    attention = jax.nn.softmax(scores, axis=1)
    return attention @ v


if __name__ == "__main__":
    input_dim = 32   # D
    seq = 8          # N

    key = jax.random.PRNGKey(0)
    kx, kq, kk, kv, kl, ko = jax.random.split(key, 6)

    x = jax.random.normal(kx, (seq, input_dim), jnp.float32)

    wq, bq = _torch_linear_init(kq, input_dim, input_dim)
    wk, bk = _torch_linear_init(kk, input_dim, input_dim)
    wv, bv = _torch_linear_init(kv, input_dim, input_dim)
    # Layers defined in the module but unused in forward() (self.linear, self.output).
    _wl, _bl = _torch_linear_init(kl, input_dim, input_dim)
    _wo, _bo = _torch_linear_init(ko, 1, input_dim)

    out = self_attention_pallas(x, wq, bq, wk, bk, wv, bv)
    out = jax.block_until_ready(out)

    ref = reference_self_attention(x, wq, bq, wk, bk, wv, bv)
    assert out.shape == (seq, input_dim)
    max_err = float(jnp.max(jnp.abs(out - ref)))
    # Tolerance reflects bf16 MXU operands (f32 accumulation, f32 softmax stats).
    assert jnp.allclose(out, ref, atol=2e-2, rtol=2e-2), (
        f"mismatch vs reference (max abs err {max_err})")

    print("KERNEL_OK")
</pallas_src>

<mosaic_0001>
module attributes {stable_mosaic.version = 11 : i64} {
  func.func @qkv_proj_kernel(%arg0: i32, %arg1: i32, %arg2: memref<16x128xbf16, #tpu.memory_space<vmem>>, %arg3: memref<128x128xbf16, #tpu.memory_space<vmem>>, %arg4: memref<1x128xf32, #tpu.memory_space<vmem>>, %arg5: memref<16x128xbf16, #tpu.memory_space<vmem>>) attributes {dimension_semantics = [#tpu.dimension_semantics<parallel>, #tpu.dimension_semantics<arbitrary>], iteration_bounds = array<i64: 1, 3>, scalar_prefetch = 0 : i64, scratch_operands = 0 : i64, tpu.core_type = #tpu.core_type<tc>, window_params = [{transform_indices = @transform_0, window_bounds = array<i64: 16, 128>}, {transform_indices = @transform_1, window_bounds = array<i64: 128, 128>}, {transform_indices = @transform_2, window_bounds = array<i64: 1, 128>}, {transform_indices = @transform_3, window_bounds = array<i64: 16, 128>}]} {
    %c0 = arith.constant 0 : index
    %c0_0 = arith.constant 0 : index
    %0 = vector.load %arg2[%c0, %c0_0] : memref<16x128xbf16, #tpu.memory_space<vmem>>, vector<16x128xbf16>
    %c0_1 = arith.constant 0 : index
    %c0_2 = arith.constant 0 : index
    %1 = vector.load %arg3[%c0_1, %c0_2] : memref<128x128xbf16, #tpu.memory_space<vmem>>, vector<128x128xbf16>
    %cst = arith.constant dense<0.000000e+00> : vector<16x128xf32>
    %2 = tpu.matmul %0, %1, %cst {dimension_numbers = #tpu.dot_dimension_numbers<[1], [0], [0], [1], [0, 0, 1, 1], [], []>} : vector<16x128xbf16>, vector<128x128xbf16>, vector<16x128xf32> -> vector<16x128xf32>
    %c0_3 = arith.constant 0 : index
    %c0_4 = arith.constant 0 : index
    %3 = vector.load %arg4[%c0_3, %c0_4] : memref<1x128xf32, #tpu.memory_space<vmem>>, vector<1x128xf32>
    %4 = vector.broadcast %3 : vector<1x128xf32> to vector<16x128xf32>
    %5 = arith.addf %2, %4 : vector<16x128xf32>
    %6 = arith.truncf %5 : vector<16x128xf32> to vector<16x128xbf16>
    %c0_5 = arith.constant 0 : index
    %c0_6 = arith.constant 0 : index
    %7 = vector.load %arg5[%c0_5, %c0_6] : memref<16x128xbf16, #tpu.memory_space<vmem>>, vector<16x128xbf16>
    tpu.vector_store %arg5[%c0_5, %c0_6], %6 {strides = array<i32>} : memref<16x128xbf16, #tpu.memory_space<vmem>>, vector<16x128xbf16>,
    return
  }
  func.func @transform_0(%arg0: i32, %arg1: i32) -> (i32, i32) {
    %c0_i32 = arith.constant 0 : i32
    %c0_i32_0 = arith.constant 0 : i32
    return %arg0, %c0_i32 : i32, i32
  }
  func.func @transform_1(%arg0: i32, %arg1: i32) -> (i32, i32) {
    %c0_i32 = arith.constant 0 : i32
    %c0_i32_0 = arith.constant 0 : i32
    return %c0_i32, %arg1 : i32, i32
  }
  func.func @transform_2(%arg0: i32, %arg1: i32) -> (i32, i32) {
    %c0_i32 = arith.constant 0 : i32
    %c0_i32_0 = arith.constant 0 : i32
    return %c0_i32, %arg1 : i32, i32
  }
  func.func @transform_3(%arg0: i32, %arg1: i32) -> (i32, i32) {
    %c0_i32 = arith.constant 0 : i32
    return %arg0, %arg1 : i32, i32
  }
}

</mosaic_0001>

<bundles_post_ra>
// kernel: tpu_custom_call.1
= control target key start
LH: loop header
LB: loop body
LE: loop exit
PB: predicated region body
PF: predicated region fallthrough
CT: control target
= control target key end

     0   :  { %8 = vsyncpa [#allocation3], 0  ;;  %s1046_s0 = inlined_call_operand.hbm [shape: bf16[16,128], index: 0, kind: input, shape index: {}]   ;;  %s1047_s1 = inlined_call_operand.hbm [shape: bf16[128,384], index: 1, kind: input, shape index: {}]   ;;  %s1048_s2 = inlined_call_operand.vmem [shape: f32[1,384], index: 2, kind: input, shape index: {}]   ;;  %s1049_s3 = inlined_call_operand.hbm [shape: bf16[16,384], index: 3, kind: output, shape index: {}]  }
   0x1   :  { %9 = vsyncpa [#allocation6], 0 }
   0x2   :  { %11 = vsyncpa [#allocation6 + $0x1], 0 }
   0x3   :  { %12 = vsyncpa [#allocation4], 0 }
   0x4   :  { %14 = vsyncpa [#allocation4 + $0x1], 0  ;;  %s824_s12 = smov 0   ;;  %s826_s13 = smov 0  }
   0x5   :  { %s828_s14 = smov 0   ;;  %s830_s15 = smov 0  }
   0x6   :  { %s832_s16 = smov 0   ;;  %s834_s17 = smov 0  }
   0x7 LB: > { %s494_s18 = sadd.s32 4294967295, %s791_s17   ;;  %s495_s19 = sadd.s32 4294967294, %s791_s17   ;;  %s791_s17 = sphi %s834_s17, %s20_s17   ;;  %s787_s16 = sphi %s832_s16, %s1076_s16   ;;  %s783_s15 = sphi %s830_s15, %s1075_s15   ;;  %s779_s14 = sphi %s828_s14, %s1074_s14   ;;  %s775_s13 = sphi %s826_s13, %s1073_s13   ;;  %s771_s12 = sphi %s824_s12, %s1072_s12  }
   0x8   : > { %p72_p0 = scmp.ne.s32.totalorder %s779_s14, %s775_s13  ;;  %p73_p1 = scmp.eq.s32.totalorder %s791_s17, 0 }
   0x9   : > { %p78_p2 = scmp.ne.s32.totalorder %s775_s13, %s771_s12  ;;  %p861_p3 = scmp.eq.s32.totalorder %s494_s18, 0 }
   0xa   : > { %p865_p4 = por %p73_p1, %p72_p0  ;;  %p130_p5 = scmp.eq.s32.totalorder %s494_s18, 2 }
   0xb   : > { %s1057_s20 = scalar_select %p861_p3, 1, 0 }
   0xc   : > { %p871_p6 = por %p861_p3, %p78_p2  ;;  %p136_p7 = scmp.eq.s32.totalorder %s495_s19, 2 }
   0xd   : > { %p875_p8 = por %p130_p5, %p72_p0  ;;  %p496_p9 = scmp.ge.s32.totalorder %s791_s17, 1 }
   0xe   : > { %s1059_s22 = scalar_select %p871_p6, 1, 0 }
   0xf   : > { %s1060_s23 = scalar_select %p875_p8, 1, 0 }
  0x10   : > { %p880_p10 = por %p136_p7, %p78_p2  ;;  %p143_p11 = scmp.lt.s32.totalorder %s791_s17, 4 }
  0x11   : > { %s793_s26 = smov [#allocation2]   ;;  %p578_p0 = scmp.lt.s32.totalorder %s791_s17, 3 }
  0x12   : > { %s1061_s24 = scalar_select %p880_p10, 1, 0 }
  0x13   : > { %p885_p12 = pnand %p496_p9, %p143_p11  ;;  %s158_s27 = sshll.u32 %s793_s26, 4  ;;  %s159_s27 = int_to_ptr.vmem [resolvable:$true] %s158_s27 }
  0x14   : > { %p900_p2 = pnand %p578_p0, %p865_p4  ;;  %s29_s30 = sadd.s32 1, %s787_s16 }
  0x15   : > { %s1062_s25 = scalar_select %p885_p12, 1, 0 }
  0x16   : > { %p565_p13 = pneg %p885_p12  ;;  %s647_s6 = scalar_lea.hbm %s1046_s0, 128 }
  0x17   : > { %s1064_s29 = scalar_select %p900_p2, 1, 0 }
  0x18   : > { %p894_p1 = pnand %p565_p13, %p861_p3  ;;  %p648_p5 = scmp.ne.s32.totalorder %s1046_s0, %s647_s6 }
  0x19   : > { %p654_p4 = scmp.lt.u32.totalorder %s647_s6, %s1046_s0 }
  0x1a   : > { %p649_p7 = pneg %p894_p1 }
  0x1c   : > { %p650_p9 = pnand %p649_p7, %p648_p5 }
  0x1e   : > { %p651_p11 = pneg %p650_p9 }
  0x20   : > { %p656_p13 = pnand %p654_p4, %p651_p11 }
  0x22   : > { %659 = shalt.err (!%p656_p13)
}
  0x23   : > { %s660_s11 = scalar_lea.vmem %s159_s27, 128  ;;  %p668_p6 = scmp.lt.s32.totalorder %s159_s27, %s159_s27 }
  0x24   : > { %p661_p0 = scmp.ne.s32.totalorder %s159_s27, %s660_s11  ;;  %p669_p3 = scmp.lt.s32.totalorder %s660_s11, %s660_s11 }
  0x26   : > { %p663_p10 = pnand %p661_p0, %p649_p7  ;;  %p670_p12 = por %p669_p3, %p668_p6 }
  0x28   : > { %p664_p8 = pneg %p663_p10 }
  0x2a   : > { %p671_p2 = pnand %p670_p12, %p664_p8 }
  0x2c   : > { %674 = shalt.err (!%p671_p2)
}
  0x2d   : > { %s1056_s18 = smov 64   ;;  %s795_s19 = smov 4  }
  0x2e   : > { %568 = dma.hbm_to_vmem [thread:$0]  (!%p894_p1), %s1046_s0, 128, %s159_s27, [#allocation3], %s1056_s18, %s1056_s18, %s795_s19  }
  0x2f   : > { %p30_p10 = scmp.ge.s32.totalorder %s29_s30, 3  ;;  %s65_s4 = sadd.s32 1, %s779_s14 }
  0x30   : > { %s172_s5 = sand.u32 1, %s779_s14   ;;  %s500_s8 = sshll.u32 %s787_s16, 6 }
  0x31   : > { %s1078_s30 = smov (%p30_p10, %s29_s30), 0  ;;  %s499_s6 = sshll.u32 %s172_s5, 6 }
  0x32   : > { %s62_s7 = ssub.s32 %s787_s16, %s1078_s30  ;;  %s934_s10 = scalar_lea.hbm %s1047_s1, %s500_s8 }
  0x33   : > { %p63_p3 = scmp.eq.s32.totalorder %s62_s7, 0  ;;  %s176_s27 = scalar_lea.vmem [#allocation5], %s499_s6 }
  0x34   : > { %s182_s11 = sshll.u32 %s176_s27, 4  ;;  %s941_s26 = scalar_lea.sflag [#allocation6], %s172_s5  ;;  %s939_s11 = int_to_ptr.vmem [resolvable:$true] %s182_s11 }
  0x35   : > { %s937_s21 = scalar_select %p63_p3, %s779_s14, %s65_s4  }
  0x36   : > { %s675_s18 = scalar_lea.hbm %s934_s10, 1024  ;;  %p1065_p8 = scmp.ne.s32.totalorder %s1064_s29, 0 }
  0x37   : > { %p676_p6 = scmp.ne.s32.totalorder %s934_s10, %s675_s18  ;;  %s680_s28 = scalar_lea.hbm %s1047_s1, 3072 }
  0x38   : > { %p677_p12 = pneg %p1065_p8  ;;  %p681_p5 = scmp.lt.u32.totalorder %s934_s10, %s1047_s1 }
  0x39   : > { %p682_p7 = scmp.lt.u32.totalorder %s680_s28, %s675_s18  ;;  %p684_p11 = scmp.lt.u32.totalorder %s675_s18, %s934_s10 }
  0x3a   : > { %p678_p1 = pnand %p677_p12, %p676_p6 }
  0x3b   : > { %p683_p9 = por %p682_p7, %p681_p5 }
  0x3c   : > { %p679_p2 = pneg %p678_p1 }
  0x3d   : > { %p685_p4 = por %p684_p11, %p683_p9 }
  0x3f   : > { %p686_p13 = pnand %p685_p4, %p679_p2 }
  0x41   : > { %689 = shalt.err (!%p686_p13)
}
  0x42   : > { %s690_s4 = scalar_lea.vmem %s939_s11, 1024  ;;  %s796_s5 = smov [#allocation5]  }
  0x43   : > { %p691_p0 = scmp.ne.s32.totalorder %s939_s11, %s690_s4  ;;  %s695_s27 = sshll.u32 %s796_s5, 4  ;;  %s696_s27 = int_to_ptr.vmem [resolvable:$false] %s695_s27 }
  0x44   : > { %s697_s7 = scalar_lea.vmem %s696_s27, 2048  ;;  %p698_p6 = scmp.lt.s32.totalorder %s939_s11, %s696_s27 }
  0x45   : > { %p693_p10 = pnand %p691_p0, %p677_p12  ;;  %p699_p1 = scmp.lt.s32.totalorder %s697_s7, %s690_s4 }
  0x47   : > { %p694_p3 = pneg %p693_p10  ;;  %p700_p5 = por %p699_p1, %p698_p6 }
  0x49   : > { %p701_p7 = pnand %p700_p5, %p694_p3 }
  0x4b   : > { %704 = shalt.err (!%p701_p7)
}
  0x4c   : > { %s797_s18 = smov 192   ;;  %s1066_s8 = smov 64  }
  0x4d   : > { %572 = dma.hbm_to_vmem [thread:$0]  (!%p1065_p8), %s934_s10, 1024, %s939_s11, %s941_s26, %s797_s18, %s1066_s8, %s795_s19  }
  0x4e   : > { %p1067_p12 = scmp.ne.s32.totalorder %s1062_s25, 0 }
  0x4f   : > { %p1068_p2 = scmp.ne.s32.totalorder (!%p1067_p12), %s1057_s20, 0 }
  0x50   : > { %200 = sbr.rel (%p1067_p12) target bundleno = 359 (0x167), region = 32 }
  0x57   : > { %758 = dma.done.wait (%p1068_p2), [#allocation3], 128  }
  0x58   : > { %760 = vsyncadd (%p1068_p2), [#allocation3], 4294967168  ;;  %s978_s28 = sand.u32 1, %s775_s13   ;;  %p1069_p9 = scmp.ne.s32.totalorder %s1059_s22, 0 }
  0x59   : > { %s503_s29 = sshll.u32 %s978_s28, 6  ;;  %s207_s6 = scalar_lea.sflag [#allocation6], %s978_s28 }
  0x5a   : > { %s210_s9 = scalar_lea.vmem [#allocation5], %s503_s29 }
  0x5b   : > { %762 = dma.done.wait (%p1069_p9), %s207_s6, 1024  }
  0x5c   : > { %764 = vsyncadd (%p1069_p9), %s207_s6, 4294966272  ;;  %v798_v0 = vmov 0.0   ;;  %vm799_vm0 = vmmov 0   ;;  %v638_v1 = vld [vmem:[%s210_s9] sm:$0xff]   ;;  %v639_v2 = vld [vmem:[%s210_s9 + $0x8] sm:$0xff]   ;;  %p237_p8 = scmp.lt.s32.totalorder %s783_s15, 2 }
  0x5d   : > { %537 = vmatprep.subr.bf16.mxu0 %v798_v0  ;;  %553 = vmatprep.mubr.msk.bf16.mxu0 %vm799_vm0, %v798_v0  ;;  %v640_v3 = vld [vmem:[%s210_s9 + $0x10] sm:$0xff]   ;;  %v641_v4 = vld [vmem:[%s210_s9 + $0x18] sm:$0xff]   ;;  %v642_v5 = vld [vmem:[%s210_s9 + $0x20] sm:$0xff]   ;;  %s504_s22 = sshll.u32 %s978_s28, 3  ;;  %s518_s4 = sshll.u32 %s783_s15, 6 }
  0x5e   : > { %538 = vmatpush3.bf16.msra.mxu0 %v638_v1  ;;  %v643_v6 = vld [vmem:[%s210_s9 + $0x28] sm:$0xff]   ;;  %v644_v7 = vld [vmem:[%s210_s9 + $0x30] sm:$0xff]   ;;  %v645_v8 = vld [vmem:[%s210_s9 + $0x38] sm:$0xff]   ;;  %s238_s20 = scalar_select %p237_p8, %s783_s15, 2 }
  0x5f   : > { %539 = vmatprep.subr.bf16.mxu0 %v798_v0  ;;  %v646_v9 = vld [vmem:[#allocation2] sm:$0xff]   ;;  %s235_s11 = scalar_lea.vmem [#allocation7], %s504_s22  ;;  %s998_s7 = scalar_lea.hbm %s1049_s3, %s518_s4 }
  0x60   : > { %s239_s10 = scalar_lea.vmem %s1048_s2, %s238_s20  ;;  %s388_s26 = sshll.u32 %s235_s11, 4  ;;  %s993_s26 = int_to_ptr.vmem [resolvable:$true] %s388_s26 }
  0x61   : > { %v505_v10 = vld [vmem:[%s239_s10] ss:$0 sm:$0xff]  ;;  %s373_s18 = scalar_lea.sflag [#allocation4], %s978_s28  ;;  %s705_s8 = scalar_lea.vmem %s993_s26, 128 }
  0x62   : > { %540 = vmatpush3.bf16.msra.mxu0 %v639_v2  ;;  %p706_p11 = scmp.ne.s32.totalorder %s993_s26, %s705_s8  ;;  %p1070_p4 = scmp.ne.s32.totalorder %s1060_s23, 0 }
  0x63   : > { %541 = vmatprep.subr.bf16.mxu0 %v798_v0  ;;  %s800_s15 = smov [#allocation7]  }
  0x64   : > { %p707_p13 = pnand %p706_p11, %p1070_p4  ;;  %s709_s29 = sshll.u32 %s800_s15, 4  ;;  %s710_s29 = int_to_ptr.vmem [resolvable:$false] %s709_s29 }
  0x65   : > { %s711_s6 = scalar_lea.vmem %s710_s29, 256  ;;  %p712_p10 = scmp.lt.s32.totalorder %s993_s26, %s710_s29 }
  0x66   : > { %542 = vmatpush3.bf16.msra.mxu0 %v640_v3  ;;  %p708_p0 = pneg %p707_p13  ;;  %p713_p3 = scmp.lt.s32.totalorder %s711_s6, %s705_s8 }
  0x67   : > { %543 = vmatprep.subr.bf16.mxu0 %v798_v0 }
  0x68   : > { %p714_p6 = por %p713_p3, %p712_p10 }
  0x6a   : > { %544 = vmatpush3.bf16.msra.mxu0 %v641_v4  ;;  %p715_p1 = pnand %p714_p6, %p708_p0 }
  0x6b   : > { %545 = vmatprep.subr.bf16.mxu0 %v798_v0 }
  0x6e   : > { %546 = vmatpush3.bf16.msra.mxu0 %v642_v5 }
  0x6f   : > { %547 = vmatprep.subr.bf16.mxu0 %v798_v0 }
  0x72   : > { %548 = vmatpush3.bf16.msra.mxu0 %v643_v6 }
  0x73   : > { %549 = vmatprep.subr.bf16.mxu0 %v798_v0 }
  0x76   : > { %550 = vmatpush3.bf16.msra.mxu0 %v644_v7 }
  0x77   : > { %551 = vmatprep.subr.bf16.mxu0 %v798_v0 }
  0x7a   : > { %552 = vmatpush3.bf16.msra.mxu0 %v645_v8 }
  0x7d   : > { %554 = vmatmul.mubr.bf16.vlgmr.msra.gmra.mrb[0].mxu0 %v646_v9 }
 0x150   : > { %v355_v11 = vpop.f32.mrb[0].mxu0 }
 0x151   : > { %v555_v12 = vpop.f32.mrb[1].mxu0  ;;  %v356_v14 = vadd.f32 %v505_v10, %v355_v11 }
 0x152   : > { %v358_v13 = vpop.f32.mrb[2].mxu0 }
 0x153   : > { %v359_v15 = vadd.f32 %v505_v10, %v358_v13  ;;  %v556_v16 = vpop.f32.mrb[3].mxu0 }
 0x155   : > { %v526_v17 = vpack.c.bf16 %v359_v15, %v356_v14 }
 0x157   : > { %527 = vst [vmem:[%s235_s11] sm:$0xff] %v526_v17  }
 0x158   : > { %718 = shalt.err (!%p715_p1)
}
 0x159   : > { %s719_s9 = scalar_lea.hbm %s998_s7, 128  ;;  %s723_s25 = scalar_lea.hbm %s1049_s3, 384 }
 0x15a   : > { %p720_p5 = scmp.ne.s32.totalorder %s998_s7, %s719_s9  ;;  %p724_p2 = scmp.lt.u32.totalorder %s998_s7, %s1049_s3 }
 0x15b   : > { %p725_p9 = scmp.lt.u32.totalorder %s723_s25, %s719_s9  ;;  %p727_p11 = scmp.lt.u32.totalorder %s719_s9, %s998_s7 }
 0x15c   : > { %p721_p7 = pnand %p720_p5, %p1070_p4 }
 0x15d   : > { %p726_p8 = por %p725_p9, %p724_p2 }
 0x15e   : > { %p722_p12 = pneg %p721_p7 }
 0x15f   : > { %p728_p13 = por %p727_p11, %p726_p8 }
 0x161   : > { %p729_p0 = pnand %p728_p13, %p722_p12 }
 0x163   : > { %732 = shalt.err (!%p729_p0)
}
 0x164   : > { %s801_s11 = smov 64   ;;  %s802_s4 = smov 192  }
 0x165   : > { %s803_s5 = smov 4  }
 0x166   : > { %563 = dma.vmem_to_hbm [thread:$0]  (%p1070_p4), %s993_s26, 128, %s998_s7, %s373_s18, %s801_s11, %s802_s4, %s803_s5  }
 0x167 PF: > { %p580_p10 = scmp.ge.s32.totalorder %s791_s17, 2  ;;  %s403_s27 = sand.u32 1, %s771_s12  }
 0x168   : > { %p1071_p3 = scmp.ne.s32.totalorder %s1061_s24, 0  ;;  %s404_s8 = scalar_lea.sflag [#allocation4], %s403_s27 }
 0x16a   : > { %p574_p6 = pnand %p580_p10, %p1071_p3 }
 0x16c   : > { %766 = dma.done.wait (!%p574_p6), %s404_s8, 128  }
 0x16d   : > { %768 = vsyncadd (!%p574_p6), %s404_s8, 4294967168  ;;  %s20_s17 = sadd.s32 1, %s791_s17   ;;  %s1072_s12 = smov %s775_s13 }
 0x16e   : > { %p17_p1 = scmp.ge.s32.totalorder %s20_s17, 5   ;;  %s1073_s13 = smov %s779_s14 }
 0x16f   : > { %s1074_s14 = smov %s937_s21  ;;  %s1075_s15 = smov %s787_s16 }
 0x170   : > { %s1076_s16 = smov %s1078_s30  ;;  %19 = sbr.rel (!%p17_p1) target bundleno = 7 (0x7), region = 86 }
 0x177   :  { %409 = vsyncpa [#allocation3], 1 }
 0x178   :  { %411 = vsyncpa [#allocation3 + $0x1], 1 }
 0x179   :  { %412 = vsyncpa [#allocation6], 1 }
 0x17a   :  { %414 = vsyncpa [#allocation6 + $0x1], 1 }
 0x17b   :  { %415 = vsyncpa [#allocation4], 1 }
 0x17c   :  { %417 = vsyncpa [#allocation4 + $0x1], 1 }

</bundles_post_ra>
